<compile_context>
chip_gen: v7x
topology: tpu7x:2x2x1
jax: 0.10.0
libtpu: 0.0.40
codegen_flags: <defaults>
</compile_context>

<pallas_src>
import math

import jax
import jax.numpy as jnp
from jax.experimental import pallas as pl
from jax.experimental.pallas import tpu as pltpu

HIDDEN = 512


def _round_up(x, m):
    return ((x + m - 1) // m) * m


def _cdiv(a, b):
    return -(-a // b)


# ----------------------------- Pallas kernel ------------------------------
def _fused_actor_kernel(x_ref, w1_ref, b1_ref, w2_ref, b2_ref, o_ref):
    # x_ref:  (tm, K)  f32    w1_ref: (K, H)   bf16   b1_ref: (1, H)   f32
    # w2_ref: (H, Ap)  bf16   b2_ref: (1, Ap)  f32    o_ref:  (tm, Ap) f32
    x = x_ref[...].astype(jnp.bfloat16)            # in-kernel cast (VPU, ~free vs MXU)
    h = jnp.dot(x, w1_ref[...], preferred_element_type=jnp.float32)
    h = jnp.maximum(h + b1_ref[...], 0.0)          # f32 bias + ReLU
    out = jnp.dot(h.astype(jnp.bfloat16), w2_ref[...],
                  preferred_element_type=jnp.float32)
    o_ref[...] = (out + b2_ref[...]).astype(o_ref.dtype)


# --------------------------- one-time param prep ---------------------------
def prepare_params(params):
    """One-time, hoisted out of the forward hot path: bf16 MXU weights,
    action dim zero-padded to a multiple of 128 (lane-dense unmasked stores),
    2D f32 biases."""
    w1, b1 = params["w1"], params["b1"]            # (K, H), (H,)
    w2, b2 = params["w2"], params["b2"]            # (H, A), (A,)
    H = w1.shape[1]
    A = w2.shape[1]
    Ap = _round_up(A, 128)
    w2p = jnp.zeros((H, Ap), jnp.bfloat16).at[:, :A].set(w2.astype(jnp.bfloat16))
    b2p = jnp.zeros((1, Ap), jnp.float32).at[:, :A].set(b2.astype(jnp.float32))
    return {
        "w1": w1.astype(jnp.bfloat16),
        "b1": b1.reshape(1, H).astype(jnp.float32),
        "w2": w2p,
        "b2": b2p,
    }


# ------------------------------- row tiling --------------------------------
def _row_tiling(M, block_m):
    """Balanced row blocks: per-block padding < 8 rows; prefer an even number
    of grid steps >= 2 for large batches so v7x's two TCs share the work."""
    n = max(1, _cdiv(M, block_m))
    if n == 1 and M >= 256:        # large enough to split across 2 TCs
        n = 2
    if n > 1 and n % 2 == 1:       # even step count for megacore balance
        n += 1
    tm = _round_up(_cdiv(M, n), 8)
    Mp = n * tm
    return tm, Mp


# ------------------------------ forward pass ------------------------------
def basic_actor_forward(prepared, x, *, action_dim, block_m=1024):
    """x: (M, latent) f32 -> (M, action_dim) f32, fused MLP forward."""
    M, K = x.shape
    w1, b1 = prepared["w1"], prepared["b1"]
    w2, b2 = prepared["w2"], prepared["b2"]
    H = w1.shape[1]
    Ap = w2.shape[1]

    tm, Mp = _row_tiling(M, block_m)
    xp = x if Mp == M else jnp.pad(x, ((0, Mp - M), (0, 0)))

    grid = (Mp // tm,)
    flops = 2 * Mp * K * H + 2 * Mp * H * Ap
    bytes_accessed = (Mp * K * 4 + K * H * 2 + H * Ap * 2
                      + H * 4 + Ap * 4 + Mp * Ap * 4)

    out = pl.pallas_call(
        _fused_actor_kernel,
        out_shape=jax.ShapeDtypeStruct((Mp, Ap), jnp.float32),
        grid=grid,
        in_specs=[
            pl.BlockSpec((tm, K), lambda i: (i, 0)),   # x rows, tiled over grid
            pl.BlockSpec((K, H), lambda i: (0, 0)),    # w1: VMEM-resident
            pl.BlockSpec((1, H), lambda i: (0, 0)),    # b1: VMEM-resident
            pl.BlockSpec((H, Ap), lambda i: (0, 0)),   # w2: VMEM-resident
            pl.BlockSpec((1, Ap), lambda i: (0, 0)),   # b2: VMEM-resident
        ],
        out_specs=pl.BlockSpec((tm, Ap), lambda i: (i, 0)),
        compiler_params=pltpu.CompilerParams(
            dimension_semantics=("parallel",)),         # shard M across TCs
        cost_estimate=pl.CostEstimate(
            flops=flops, transcendentals=0, bytes_accessed=bytes_accessed),
    )(xp, w1, b1, w2, b2)

    return out[:M, :action_dim]


# ------------------------------ init helpers ------------------------------
def _orthogonal(key, n_in, n_out, gain):
    """(n_in, n_out) weight ~ torch.nn.init.orthogonal_ on (n_out, n_in), transposed."""
    rows, cols = n_out, n_in
    a = jax.random.normal(key, (max(rows, cols), min(rows, cols)), jnp.float32)
    q, r = jnp.linalg.qr(a)
    d = jnp.diagonal(r)
    q = q * jnp.where(d >= 0, 1.0, -1.0)
    if rows < cols:
        q = q.T
    return (gain * q[:rows, :cols]).T           # (n_in, n_out)


def init_params(key, latent_size, action_dim):
    k1, k2 = jax.random.split(key)
    return {
        "w1": _orthogonal(k1, latent_size, HIDDEN, math.sqrt(2.0)),
        "b1": jnp.zeros((HIDDEN,), jnp.float32),
        "w2": _orthogonal(k2, HIDDEN, action_dim, 0.01 * math.sqrt(2.0)),
        "b2": jnp.zeros((action_dim,), jnp.float32),
    }


def reference_forward(params, x):
    h = jnp.maximum(x @ params["w1"] + params["b1"], 0.0)
    return h @ params["w2"] + params["b2"]


# ----------------------------------- main ----------------------------------
if __name__ == "__main__":
    key = jax.random.PRNGKey(0)
    kx, kp = jax.random.split(key)

    # Small shapes consistent with BasicActor(latent_size, action_shape):
    BATCH, LATENT, ACTION_DIM = 8, 32, 6        # action_shape = (6,)
    x = jax.random.normal(kx, (BATCH, LATENT), jnp.float32)
    params = init_params(kp, LATENT, ACTION_DIM)
    prepared = prepare_params(params)           # one-time weight prep

    fwd = jax.jit(basic_actor_forward, static_argnames=("action_dim", "block_m"))
    out = jax.block_until_ready(fwd(prepared, x, action_dim=ACTION_DIM))

    assert out.shape == (BATCH, ACTION_DIM), out.shape
    assert out.dtype == jnp.float32

    # Parity check vs plain-JAX f32 reference (loose tolerance: bf16 MXU inputs).
    ref = reference_forward(params, x)
    assert jnp.allclose(out, ref, atol=5e-2, rtol=5e-2), \
        float(jnp.max(jnp.abs(out - ref)))

    # Exercise the non-aligned (padded) batch path, still tiny.
    x2 = jax.random.normal(kx, (20, LATENT), jnp.float32)
    out2 = jax.block_until_ready(fwd(prepared, x2, action_dim=ACTION_DIM))
    ref2 = reference_forward(params, x2)
    assert out2.shape == (20, ACTION_DIM), out2.shape
    assert jnp.allclose(out2, ref2, atol=5e-2, rtol=5e-2), \
        float(jnp.max(jnp.abs(out2 - ref2)))

    print("KERNEL_OK")
</pallas_src>

<mosaic_0001>
module attributes {stable_mosaic.version = 11 : i64} {
  func.func @_fused_actor_kernel(%arg0: i32, %arg1: memref<8x32xf32, #tpu.memory_space<vmem>>, %arg2: memref<32x512xbf16, #tpu.memory_space<vmem>>, %arg3: memref<1x512xf32, #tpu.memory_space<vmem>>, %arg4: memref<512x128xbf16, #tpu.memory_space<vmem>>, %arg5: memref<1x128xf32, #tpu.memory_space<vmem>>, %arg6: memref<8x128xf32, #tpu.memory_space<vmem>>) attributes {dimension_semantics = [#tpu.dimension_semantics<parallel>], iteration_bounds = array<i64: 1>, scalar_prefetch = 0 : i64, scratch_operands = 0 : i64, tpu.core_type = #tpu.core_type<tc>, window_params = [{transform_indices = @transform_0, window_bounds = array<i64: 8, 32>}, {pipeline_mode = #tpu.pipeline_mode<synchronous>, transform_indices = @transform_1, window_bounds = array<i64: 32, 512>}, {pipeline_mode = #tpu.pipeline_mode<synchronous>, transform_indices = @transform_2, window_bounds = array<i64: 1, 512>}, {pipeline_mode = #tpu.pipeline_mode<synchronous>, transform_indices = @transform_3, window_bounds = array<i64: 512, 128>}, {pipeline_mode = #tpu.pipeline_mode<synchronous>, transform_indices = @transform_4, window_bounds = array<i64: 1, 128>}, {transform_indices = @transform_5, window_bounds = array<i64: 8, 128>}]} {
    %c0 = arith.constant 0 : index
    %c0_0 = arith.constant 0 : index
    %0 = vector.load %arg1[%c0, %c0_0] : memref<8x32xf32, #tpu.memory_space<vmem>>, vector<8x32xf32>
    %1 = arith.truncf %0 : vector<8x32xf32> to vector<8x32xbf16>
    %c0_1 = arith.constant 0 : index
    %c0_2 = arith.constant 0 : index
    %2 = vector.load %arg2[%c0_1, %c0_2] : memref<32x512xbf16, #tpu.memory_space<vmem>>, vector<32x512xbf16>
    %cst = arith.constant dense<0.000000e+00> : vector<8x512xf32>
    %3 = tpu.matmul %1, %2, %cst {dimension_numbers = #tpu.dot_dimension_numbers<[1], [0], [0], [1], [0, 0, 1, 1], [], []>} : vector<8x32xbf16>, vector<32x512xbf16>, vector<8x512xf32> -> vector<8x512xf32>
    %c0_3 = arith.constant 0 : index
    %c0_4 = arith.constant 0 : index
    %4 = vector.load %arg3[%c0_3, %c0_4] : memref<1x512xf32, #tpu.memory_space<vmem>>, vector<1x512xf32>
    %5 = vector.broadcast %4 : vector<1x512xf32> to vector<8x512xf32>
    %6 = arith.addf %3, %5 : vector<8x512xf32>
    %cst_5 = arith.constant 0.000000e+00 : f32
    %7 = vector.broadcast %cst_5 : f32 to vector<8x512xf32>
    %8 = arith.maximumf %6, %7 : vector<8x512xf32>
    %9 = arith.truncf %8 : vector<8x512xf32> to vector<8x512xbf16>
    %c0_6 = arith.constant 0 : index
    %c0_7 = arith.constant 0 : index
    %10 = vector.load %arg4[%c0_6, %c0_7] : memref<512x128xbf16, #tpu.memory_space<vmem>>, vector<512x128xbf16>
    %cst_8 = arith.constant dense<0.000000e+00> : vector<8x128xf32>
    %11 = tpu.matmul %9, %10, %cst_8 {dimension_numbers = #tpu.dot_dimension_numbers<[1], [0], [0], [1], [0, 0, 1, 1], [], []>} : vector<8x512xbf16>, vector<512x128xbf16>, vector<8x128xf32> -> vector<8x128xf32>
    %c0_9 = arith.constant 0 : index
    %c0_10 = arith.constant 0 : index
    %12 = vector.load %arg5[%c0_9, %c0_10] : memref<1x128xf32, #tpu.memory_space<vmem>>, vector<1x128xf32>
    %13 = vector.broadcast %12 : vector<1x128xf32> to vector<8x128xf32>
    %14 = arith.addf %11, %13 : vector<8x128xf32>
    %c0_11 = arith.constant 0 : index
    %c0_12 = arith.constant 0 : index
    %15 = vector.load %arg6[%c0_11, %c0_12] : memref<8x128xf32, #tpu.memory_space<vmem>>, vector<8x128xf32>
    tpu.vector_store %arg6[%c0_11, %c0_12], %14 {strides = array<i32>} : memref<8x128xf32, #tpu.memory_space<vmem>>, vector<8x128xf32>,
    return
  }
  func.func @transform_0(%arg0: i32) -> (i32, i32) {
    %c0_i32 = arith.constant 0 : i32
    %c0_i32_0 = arith.constant 0 : i32
    return %arg0, %c0_i32 : i32, i32
  }
  func.func @transform_1(%arg0: i32) -> (i32, i32) {
    %c0_i32 = arith.constant 0 : i32
    %c0_i32_0 = arith.constant 0 : i32
    %c0_i32_1 = arith.constant 0 : i32
    return %c0_i32, %c0_i32_0 : i32, i32
  }
  func.func @transform_2(%arg0: i32) -> (i32, i32) {
    %c0_i32 = arith.constant 0 : i32
    %c0_i32_0 = arith.constant 0 : i32
    %c0_i32_1 = arith.constant 0 : i32
    return %c0_i32, %c0_i32_0 : i32, i32
  }
  func.func @transform_3(%arg0: i32) -> (i32, i32) {
    %c0_i32 = arith.constant 0 : i32
    %c0_i32_0 = arith.constant 0 : i32
    %c0_i32_1 = arith.constant 0 : i32
    return %c0_i32, %c0_i32_0 : i32, i32
  }
  func.func @transform_4(%arg0: i32) -> (i32, i32) {
    %c0_i32 = arith.constant 0 : i32
    %c0_i32_0 = arith.constant 0 : i32
    %c0_i32_1 = arith.constant 0 : i32
    return %c0_i32, %c0_i32_0 : i32, i32
  }
  func.func @transform_5(%arg0: i32) -> (i32, i32) {
    %c0_i32 = arith.constant 0 : i32
    %c0_i32_0 = arith.constant 0 : i32
    return %arg0, %c0_i32 : i32, i32
  }
}

</mosaic_0001>

<bundles_post_ra>
// kernel: basic_actor_forward.1
= control target key start
LH: loop header
LB: loop body
LE: loop exit
PB: predicated region body
PF: predicated region fallthrough
CT: control target
= control target key end

     0   :  { %10 = vsyncpa [#allocation3], 0  ;;  %s921_s0 = inlined_call_operand.vmem [shape: f32[8,32], index: 0, kind: input, shape index: {}]   ;;  %s922_s1 = inlined_call_operand.hbm [shape: bf16[32,512], index: 1, kind: input, shape index: {}]   ;;  %s923_s2 = inlined_call_operand.hbm [shape: f32[1,512], index: 2, kind: input, shape index: {}]   ;;  %s924_s3 = inlined_call_operand.hbm [shape: bf16[512,128], index: 3, kind: input, shape index: {}]   ;;  %s925_s4 = inlined_call_operand.vmem [shape: f32[1,128], index: 4, kind: input, shape index: {}]   ;;  %s926_s5 = inlined_call_operand.hbm [shape: f32[8,128], index: 5, kind: output, shape index: {}]  }
   0x1   :  { %11 = vsyncpa [#allocation6], 0 }
   0x2   :  { %12 = vsyncpa [#allocation4], 0  ;;  %s821_s18 = smov [#allocation5]   ;;  %s822_s20 = smov [#allocation2]  }
   0x3   :  { %s33_s19 = sshll.u32 %s821_s18, 4  ;;  %s20_s21 = sshll.u32 %s822_s20, 4  ;;  %s34_s19 = int_to_ptr.vmem [resolvable:$true] %s33_s19  ;;  %s860_s21 = int_to_ptr.vmem [resolvable:$true] %s20_s21 }
   0x4   :  { %s727_s24 = scalar_lea.hbm %s923_s2, 64 }
   0x5   :  { %p728_p0 = scmp.ne.s32.totalorder %s923_s2, %s727_s24  ;;  %p731_p1 = scmp.lt.u32.totalorder %s727_s24, %s923_s2 }
   0x7   :  { %p733_p2 = pnand %p731_p1, %p728_p0 }
   0x9   :  { %736 = shalt.err (!%p733_p2)
}
   0xa   :  { %s737_s29 = scalar_lea.vmem %s34_s19, 64  ;;  %p742_p4 = scmp.lt.s32.totalorder %s34_s19, %s34_s19 }
   0xb   :  { %p738_p3 = scmp.ne.s32.totalorder %s34_s19, %s737_s29  ;;  %p743_p5 = scmp.lt.s32.totalorder %s737_s29, %s737_s29 }
   0xd   :  { %p744_p6 = por %p743_p5, %p742_p4 }
   0xf   :  { %p745_p7 = pnand %p744_p6, %p738_p3 }
  0x11   :  { %748 = shalt.err (!%p745_p7)
}
  0x12   :  { %36 = dma.hbm_to_vmem [thread:$0]  %s923_s2, 64, %s34_s19, [#allocation6]  }
  0x13   :  { %s749_s9 = scalar_lea.hbm %s922_s1, 1024 }
  0x14   :  { %p750_p8 = scmp.ne.s32.totalorder %s922_s1, %s749_s9  ;;  %p753_p9 = scmp.lt.u32.totalorder %s749_s9, %s922_s1 }
  0x16   :  { %p755_p10 = pnand %p753_p9, %p750_p8 }
  0x18   :  { %758 = shalt.err (!%p755_p10)
}
  0x19   :  { %s759_s14 = scalar_lea.vmem %s860_s21, 1024  ;;  %p764_p12 = scmp.lt.s32.totalorder %s860_s21, %s860_s21 }
  0x1a   :  { %p760_p11 = scmp.ne.s32.totalorder %s860_s21, %s759_s14  ;;  %p765_p13 = scmp.lt.s32.totalorder %s759_s14, %s759_s14 }
  0x1c   :  { %p766_p0 = por %p765_p13, %p764_p12 }
  0x1e   :  { %p767_p1 = pnand %p766_p0, %p760_p11 }
  0x20   :  { %770 = shalt.err (!%p767_p1)
}
  0x21   :  { %s823_s2 = smov 256   ;;  %s824_s15 = smov 16  }
  0x22   :  { %26 = dma.hbm_to_vmem [thread:$0]  %s922_s1, 1024, %s860_s21, [#allocation3], %s823_s2, %s823_s2, %s824_s15  }
  0x23   :  { %s825_s18 = smov [#allocation7]   ;;  %s771_s23 = scalar_lea.hbm %s924_s3, 4096 }
  0x24   :  { %s42_s19 = sshll.u32 %s825_s18, 4  ;;  %p772_p2 = scmp.ne.s32.totalorder %s924_s3, %s771_s23  ;;  %s43_s19 = int_to_ptr.vmem [resolvable:$true] %s42_s19 }
  0x25   :  { %p775_p3 = scmp.lt.u32.totalorder %s771_s23, %s924_s3 }
  0x27   :  { %p777_p4 = pnand %p775_p3, %p772_p2 }
  0x29   :  { %780 = shalt.err (!%p777_p4)
}
  0x2a   :  { %s781_s28 = scalar_lea.vmem %s43_s19, 4096  ;;  %p786_p6 = scmp.lt.s32.totalorder %s43_s19, %s43_s19 }
  0x2b   :  { %p782_p5 = scmp.ne.s32.totalorder %s43_s19, %s781_s28  ;;  %p787_p7 = scmp.lt.s32.totalorder %s781_s28, %s781_s28 }
  0x2d   :  { %p788_p8 = por %p787_p7, %p786_p6 }
  0x2f   :  { %p789_p9 = pnand %p788_p8, %p782_p5 }
  0x31   :  { %792 = shalt.err (!%p789_p9)
}
  0x32   :  { %s826_s1 = smov 64   ;;  %s827_s21 = smov 4  }
  0x33   :  { %48 = dma.hbm_to_vmem [thread:$0]  %s924_s3, 4096, %s43_s19, [#allocation6], %s826_s1, %s826_s1, %s827_s21  }
  0x34   :  { %815 = dma.done.wait [#allocation3], 1024  }
  0x35   :  { %816 = vsyncadd [#allocation3], 4294966272 }
  0x36   :  { %817 = dma.done.wait [#allocation6], 4160  }
  0x37   :  { %818 = vsyncadd [#allocation6], 4294963136  ;;  %v828_v0 = vmov 0   ;;  %v683_v1 = vld [vmem:[#allocation2 + $0x4] ss:$16 sps:$4 sm:$0xff]   ;;  %v61_v9 = vld [vmem:[%s921_s0] sm:$0xff]  ;;  %v73_v43 = vlaneseq }
  0x38   :  { %169 = vmatprep.mubr.bf16.mxu0 %v828_v0  ;;  %210 = vmatprep.mubr.bf16.mxu1 %v828_v0  ;;  %v685_v2 = vld [vmem:[#allocation2 + $0xc] ss:$16 sps:$4 sm:$0xff]   ;;  %v687_v3 = vld [vmem:[#allocation2] ss:$16 sps:$4 sm:$0xff]   ;;  %v688_v4 = vld [vmem:[#allocation2 + $0x8] ss:$16 sps:$4 sm:$0xff]   ;;  %v62_v11 = vpack.c.bf16 %v61_v9, %v61_v9 }
  0x39   :  { %137 = vmatprep.subr.bf16.mxu0 %v683_v1  ;;  %178 = vmatprep.subr.bf16.mxu1 %v685_v2  ;;  %v689_v5 = vld [vmem:[#allocation2 + $0x24] ss:$16 sps:$4 sm:$0xff]   ;;  %v691_v6 = vld [vmem:[#allocation2 + $0x2c] ss:$16 sps:$4 sm:$0xff]   ;;  %v693_v7 = vld [vmem:[#allocation2 + $0x20] ss:$16 sps:$4 sm:$0xff]  }
  0x3a   :  { %138 = vmatpush1.bf16.msra.mxu0 %v687_v3  ;;  %179 = vmatpush1.bf16.msra.mxu1 %v688_v4  ;;  %v694_v8 = vld [vmem:[#allocation2 + $0x28] ss:$16 sps:$4 sm:$0xff]   ;;  %vm133_vm0 = vcmask 261120   ;;  %v699_v15 = vld [vmem:[#allocation7 + $0x48] sm:$0xff]   ;;  %v707_v23 = vld [vmem:[#allocation7 + $0x58] sm:$0xff]   ;;  %v74_v44 = vshrl.u32 %v73_v43, 7 }
  0x3b   :  { %139 = vmatprep.subr.bf16.mxu0 %v689_v5  ;;  %180 = vmatprep.subr.bf16.mxu1 %v691_v6  ;;  %v695_v10 = vld [vmem:[#allocation7 + $0x40] sm:$0xff]   ;;  %v700_v16 = vld [vmem:[#allocation7 + $0xc8] sm:$0xff]   ;;  %v703_v19 = vld [vmem:[#allocation7 + $0x50] sm:$0xff]   ;;  %s829_s8 = smov [#allocation8]  }
  0x3c   :  { %v696_v12 = vld [vmem:[#allocation7 + $0xc0] sm:$0xff]   ;;  %v701_v17 = vld [vmem:[#allocation7 + $0x8] sm:$0xff]   ;;  %v704_v20 = vld [vmem:[#allocation7 + $0xd0] sm:$0xff]   ;;  %v75_v45 = vsub.s32 0, %v74_v44  ;;  %v83_v46 = vsub.s32 2, %v74_v44  ;;  %v79_v48 = vsub.s32 1, %v74_v44 }
  0x3d   :  { %v697_v13 = vld [vmem:[#allocation7] sm:$0xff]   ;;  %v702_v18 = vld [vmem:[#allocation7 + $0x88] sm:$0xff]   ;;  %v705_v21 = vld [vmem:[#allocation7 + $0x10] sm:$0xff]   ;;  %v87_v49 = vsub.s32 3, %v74_v44  ;;  %s577_s9 = sshll.u32 %s829_s8, 4  ;;  %s578_s9 = int_to_ptr.vmem [resolvable:$true] %s577_s9 }
  0x3e   :  { %140 = vmatpush1.bf16.msra.mxu0 %v693_v7  ;;  %181 = vmatpush1.bf16.msra.mxu1 %v694_v8  ;;  %v698_v14 = vld [vmem:[#allocation7 + $0x80] sm:$0xff]   ;;  %v706_v22 = vld [vmem:[#allocation7 + $0x90] sm:$0xff]   ;;  %v708_v24 = vld [vmem:[#allocation7 + $0xd8] sm:$0xff]   ;;  %s793_s10 = scalar_lea.vmem %s578_s9, 128  ;;  %p798_p11 = scmp.lt.s32.totalorder %s578_s9, %s578_s9 }
  0x3f   :  { %630 = vmatprep.subr.bf16.mxu0 %v695_v10  ;;  %652 = vmatprep.subr.bf16.mxu1 %v696_v12  ;;  %v709_v25 = vld [vmem:[#allocation7 + $0x18] sm:$0xff]   ;;  %v711_v27 = vld [vmem:[#allocation7 + $0x60] sm:$0xff]   ;;  %v715_v31 = vld [vmem:[#allocation7 + $0x68] sm:$0xff]   ;;  %p794_p10 = scmp.ne.s32.totalorder %s578_s9, %s793_s10  ;;  %p799_p12 = scmp.lt.s32.totalorder %s793_s10, %s793_s10 }
  0x40   :  { %v710_v26 = vld [vmem:[#allocation7 + $0x98] sm:$0xff]   ;;  %v712_v28 = vld [vmem:[#allocation7 + $0xe0] sm:$0xff]   ;;  %v716_v32 = vld [vmem:[#allocation7 + $0xe8] sm:$0xff]  }
  0x41   :  { %595 = vmatmul.mubr.msk.bf16.vlgmr.msra.gmra.mrb[0].mxu0 %vm133_vm0, %v62_v11  ;;  %596 = vmatmul.mubr.msk.bf16.vlgmr.msra.gmra.mrb[0].mxu1 %vm133_vm0, %v62_v11  ;;  %v713_v29 = vld [vmem:[#allocation7 + $0x20] sm:$0xff]   ;;  %v717_v33 = vld [vmem:[#allocation7 + $0x28] sm:$0xff]   ;;  %v719_v35 = vld [vmem:[#allocation7 + $0x70] sm:$0xff]   ;;  %p800_p13 = por %p799_p12, %p798_p11 }
  0x42   :  { %631 = vmatpush3.bf16.msra.mxu0 %v697_v13  ;;  %653 = vmatpush3.bf16.msra.mxu1 %v698_v14  ;;  %v714_v30 = vld [vmem:[#allocation7 + $0xa0] sm:$0xff]   ;;  %v718_v34 = vld [vmem:[#allocation7 + $0xa8] sm:$0xff]   ;;  %v720_v36 = vld [vmem:[#allocation7 + $0xf0] sm:$0xff]  }
  0x43   :  { %632 = vmatprep.subr.bf16.mxu0 %v699_v15  ;;  %654 = vmatprep.subr.bf16.mxu1 %v700_v16  ;;  %v721_v37 = vld [vmem:[#allocation7 + $0x30] sm:$0xff]   ;;  %v723_v39 = vld [vmem:[#allocation7 + $0x78] sm:$0xff]   ;;  %p801_p0 = pnand %p800_p13, %p794_p10 }
  0x44   :  { %v722_v38 = vld [vmem:[#allocation7 + $0xb0] sm:$0xff]   ;;  %v724_v40 = vld [vmem:[#allocation7 + $0xf8] sm:$0xff]  }
  0x45   :  { %v725_v41 = vld [vmem:[#allocation7 + $0x38] sm:$0xff]   ;;  %v597_v12 = vld [vmem:[%s925_s4] ss:$0 sm:$0xff] }
  0x46   :  { %633 = vmatpush3.bf16.msra.mxu0 %v701_v17  ;;  %655 = vmatpush3.bf16.msra.mxu1 %v702_v18  ;;  %v726_v42 = vld [vmem:[#allocation7 + $0xb8] sm:$0xff]  }
  0x47   :  { %634 = vmatprep.subr.bf16.mxu0 %v703_v19  ;;  %656 = vmatprep.subr.bf16.mxu1 %v704_v20  ;;  %v71_v47 = vld [vmem:[#allocation5] sm:$0xf] }
  0x48   :  { %v76_v50 = vrot.slane %v71_v47, %v75_v45  ;;  %v84_v51 = vrot.slane %v71_v47, %v83_v46  ;;  %v80_v52 = vrot.slane %v71_v47, %v79_v48  ;;  %v88_v53 = vrot.slane %v71_v47, %v87_v49 }
  0x4a   :  { %635 = vmatpush3.bf16.msra.mxu0 %v705_v21  ;;  %657 = vmatpush3.bf16.msra.mxu1 %v706_v22 }
  0x4b   :  { %636 = vmatprep.subr.bf16.mxu0 %v707_v23  ;;  %658 = vmatprep.subr.bf16.mxu1 %v708_v24 }
  0x4e   :  { %637 = vmatpush3.bf16.msra.mxu0 %v709_v25  ;;  %659 = vmatpush3.bf16.msra.mxu1 %v710_v26 }
  0x4f   :  { %638 = vmatprep.subr.bf16.mxu0 %v711_v27  ;;  %660 = vmatprep.subr.bf16.mxu1 %v712_v28 }
  0x52   :  { %639 = vmatpush3.bf16.msra.mxu0 %v713_v29  ;;  %661 = vmatpush3.bf16.msra.mxu1 %v714_v30 }
  0x53   :  { %640 = vmatprep.subr.bf16.mxu0 %v715_v31  ;;  %662 = vmatprep.subr.bf16.mxu1 %v716_v32 }
  0x56   :  { %641 = vmatpush3.bf16.msra.mxu0 %v717_v33  ;;  %663 = vmatpush3.bf16.msra.mxu1 %v718_v34 }
  0x57   :  { %642 = vmatprep.subr.bf16.mxu0 %v719_v35  ;;  %664 = vmatprep.subr.bf16.mxu1 %v720_v36 }
  0x5a   :  { %643 = vmatpush3.bf16.msra.mxu0 %v721_v37  ;;  %665 = vmatpush3.bf16.msra.mxu1 %v722_v38 }
  0x5b   :  { %644 = vmatprep.subr.bf16.mxu0 %v723_v39  ;;  %666 = vmatprep.subr.bf16.mxu1 %v724_v40 }
  0x5e   :  { %645 = vmatpush3.bf16.msra.mxu0 %v725_v41  ;;  %667 = vmatpush3.bf16.msra.mxu1 %v726_v42 }
 0x114   :  { %v171_v54 = vpop.f32.mrb[0].mxu0  ;;  %v212_v55 = vpop.f32.mrb[0].mxu1 }
 0x115   :  { %v172_v56 = vadd.f32 %v171_v54, %v76_v50  ;;  %v213_v57 = vadd.f32 %v212_v55, %v84_v51  ;;  %v173_v58 = vpop.f32.mrb[1].mxu0  ;;  %v214_v59 = vpop.f32.mrb[1].mxu1 }
 0x116   :  { %v174_v60 = vadd.f32 %v173_v58, %v80_v52  ;;  %v215_v61 = vadd.f32 %v214_v59, %v88_v53  ;;  %v175_v62 = vpop.f32.mrb[2].mxu0  ;;  %v216_v63 = vpop.f32.mrb[2].mxu1 }
 0x117   :  { %v219_v0 = vmax.f32 %v172_v56, 0.0  ;;  %v221_v1 = vmax.f32 %v213_v57, 0.0  ;;  %v176_v2 = vpop.f32.mrb[3].mxu0  ;;  %v217_v3 = vpop.f32.mrb[3].mxu1 }
 0x118   :  { %v220_v4 = vmax.f32 %v174_v60, 0.0  ;;  %v222_v5 = vmax.f32 %v215_v61, 0.0 }
 0x119   :  { %v225_v6 = vpack.c.bf16 %v221_v1, %v221_v1  ;;  %v223_v9 = vpack.c.bf16 %v219_v0, %v219_v0 }
 0x11a   :  { %v224_v7 = vpack.c.bf16 %v220_v4, %v220_v4  ;;  %v226_v8 = vpack.c.bf16 %v222_v5, %v222_v5 }
 0x11c   :  { %522 = vmatprep.mubr.bf16.mxu0 %v224_v7  ;;  %562 = vmatprep.mubr.bf16.mxu1 %v226_v8 }
 0x11d   :  { %523 = vmatmul.mubr.bf16.vlgmr.msra.gmra.mrb[4].mxu0 %v223_v9  ;;  %563 = vmatmul.mubr.bf16.vlgmr.msra.gmra.mrb[4].mxu1 %v225_v6 }
 0x1f0   :  { %v646_v10 = vpop.f32.mrb[4].mxu0  ;;  %v668_v11 = vpop.f32.mrb[4].mxu1 }
 0x1f1   :  { %v647_v13 = vpop.f32.mrb[5].mxu0  ;;  %v669_v14 = vpop.f32.mrb[5].mxu1 }
 0x1f2   :  { %v648_v15 = vadd.f32 %v647_v13, %v646_v10  ;;  %v670_v16 = vadd.f32 %v669_v14, %v668_v11  ;;  %v649_v17 = vpop.f32.mrb[6].mxu0  ;;  %v671_v18 = vpop.f32.mrb[6].mxu1 }
 0x1f3   :  { %v650_v19 = vpop.f32.mrb[7].mxu0  ;;  %v672_v20 = vpop.f32.mrb[7].mxu1 }
 0x1f4   :  { %v525_v21 = vadd.f32 %v648_v15, %v597_v12 }
 0x1f6   :  { %v565_v22 = vadd.f32 %v670_v16, %v525_v21 }
 0x1f8   :  { %570 = vst [vmem:[#allocation8] sm:$0xff] %v565_v22 }
 0x1f9   :  { %804 = shalt.err (!%p801_p0)
}
 0x1fa   :  { %s805_s12 = scalar_lea.hbm %s926_s5, 128 }
 0x1fb   :  { %p806_p1 = scmp.ne.s32.totalorder %s926_s5, %s805_s12  ;;  %p809_p2 = scmp.lt.u32.totalorder %s805_s12, %s926_s5 }
 0x1fd   :  { %p811_p3 = pnand %p809_p2, %p806_p1 }
 0x1ff   :  { %814 = shalt.err (!%p811_p3)
}
 0x200   :  { %580 = dma.vmem_to_hbm [thread:$0]  %s578_s9, 128, %s926_s5, [#allocation4]  }
 0x201   :  { %819 = dma.done.wait [#allocation4], 128  }
 0x202   :  { %820 = vsyncadd [#allocation4], 4294967168 }
 0x203   :  { %584 = vsyncpa [#allocation3], 1 }
 0x204   :  { %585 = vsyncpa [#allocation6], 1 }
 0x205   :  { %586 = vsyncpa [#allocation4], 1 }

</bundles_post_ra>
